<compile_context>
chip_gen: v6e
topology: v6e:2x2x1
jax: 0.10.0
libtpu: 0.0.40
codegen_flags: <defaults>
</compile_context>

<pallas_src>
import functools

import jax
import jax.numpy as jnp
from jax.experimental import pallas as pl
from jax.experimental.pallas import tpu as pltpu


# Conservative cross-generation budget for block buffers (v7x has the smallest
# VMEM: 64 MiB physical).
_VMEM_BLOCK_BUDGET = 40 << 20
_VMEM_LIMIT_CAP = 48 << 20


def _cdiv(a, b):
    return -(-a // b)


def _round_up(x, m):
    return ((x + m - 1) // m) * m


def _round_down(x, m):
    return (x // m) * m


def _param_block_bytes(rt):
    # A (rt, 1) f32 block occupies full (8, 128) VMEM tiles -> 512 B per row.
    return rt * 128 * 4


def _block_footprint(rt, row_bytes):
    # Double-buffered x in + out blocks plus two double-buffered (rt, 1) f32
    # parameter blocks (conservative for both the fused and two-pass paths).
    return 4 * rt * row_bytes + 4 * _param_block_bytes(rt)


def _vmem_limit(footprint):
    return int(min(_VMEM_LIMIT_CAP, max(32 << 20, footprint + (8 << 20))))


def _pick_row_tile(nc, hw, itemsize, target_bytes):
    """Row tile for the fused path: ~target_bytes of x per step, multiple of 8,
    footprint under the VMEM budget, and a megacore-friendly grid."""
    row_bytes = hw * itemsize
    nc_pad8 = _round_up(nc, 8)

    rt = max(8, _round_down(target_bytes // max(row_bytes, 1), 8))
    rt = min(rt, nc_pad8)
    while rt > 8 and _block_footprint(rt, row_bytes) > _VMEM_BLOCK_BUDGET:
        rt = max(8, _round_down(rt // 2, 8))

    # v7x megacore balance: prefer an even, >=4-step grid when rows allow it
    # (harmless on single-TC v5e / v6e).
    steps = _cdiv(nc, rt)
    max_steps = nc_pad8 // 8
    want = min(4, max_steps)
    if steps < want:
        rt = max(8, _round_up(_cdiv(nc, want), 8))
        steps = _cdiv(nc, rt)
    if steps > 1 and steps % 2 == 1 and steps + 1 <= max_steps:
        rt_even = max(8, _round_up(_cdiv(nc, steps + 1), 8))
        if _cdiv(nc, rt_even) % 2 == 0:
            rt = rt_even
    return rt


def _pick_spatial_tiles(nc, hw, itemsize, target_bytes, force_spatial_tile):
    """Tiles for the two-pass fallback: spatial tile multiple of 128, row tile
    multiple of 8, block footprint under the VMEM budget."""
    nc_pad8 = _round_up(nc, 8)
    if force_spatial_tile is not None:
        s_tile = max(128, _round_down(int(force_spatial_tile), 128))
    else:
        s_tile = max(128, _round_down(target_bytes // (8 * itemsize), 128))
    s_tile = min(s_tile, _round_up(hw, 128))

    row_bytes = s_tile * itemsize
    rt = max(8, _round_down(target_bytes // row_bytes, 8))
    rt = min(rt, nc_pad8)
    while rt > 8 and _block_footprint(rt, row_bytes) > _VMEM_BLOCK_BUDGET:
        rt = max(8, _round_down(rt // 2, 8))
    return rt, s_tile


# ----------------------------- kernels --------------------------------------


def _adain_fused_kernel(x_ref, w_ref, b_ref, o_ref, *, eps, inv_hw):
    """Single-pass path: whole spatial extent resident per row block."""
    x = x_ref[...].astype(jnp.float32)
    # Two-pass moments (robust to |mean| >> std); x is VMEM-resident so the
    # extra sweep is free while HBM-bound, and d is reused for the output.
    mean = jnp.sum(x, axis=-1, keepdims=True) * inv_hw
    d = x - mean
    var = jnp.sum(d * d, axis=-1, keepdims=True) * inv_hw
    scale = jax.lax.rsqrt(var + eps) * w_ref[...]          # (rt, 1)
    o_ref[...] = (d * scale + b_ref[...]).astype(o_ref.dtype)


def _adain_moments_kernel(x_ref, w_ref, b_ref, scale_ref, shift_ref,
                          s1_ref, s2_ref, *, eps, hw, s_tile):
    """Fallback pass 1: accumulate per-row s1/s2 over spatial chunks, then emit
    per-row (scale, shift)."""
    j = pl.program_id(1)

    @pl.when(j == 0)
    def _():
        s1_ref[...] = jnp.zeros_like(s1_ref)
        s2_ref[...] = jnp.zeros_like(s2_ref)

    x = x_ref[...].astype(jnp.float32)
    # Mask the ragged spatial tail: the last block's out-of-bounds lanes hold
    # garbage, so zero them before they touch the moments.
    col = jax.lax.broadcasted_iota(jnp.int32, x.shape, 1) + j * s_tile
    x = jnp.where(col < hw, x, 0.0)
    s1_ref[...] += jnp.sum(x, axis=-1, keepdims=True)
    s2_ref[...] += jnp.sum(x * x, axis=-1, keepdims=True)

    @pl.when(j == pl.num_programs(1) - 1)
    def _():
        inv_hw = 1.0 / hw
        mean = s1_ref[...] * inv_hw
        # Single-pass variance here (keeps HBM traffic at 3 passes total);
        # clamp guards against cancellation / garbage-row negatives.
        var = jnp.maximum(s2_ref[...] * inv_hw - mean * mean, 0.0)
        scale = jax.lax.rsqrt(var + eps) * w_ref[...]
        scale_ref[...] = scale
        shift_ref[...] = b_ref[...] - mean * scale


def _adain_apply_kernel(x_ref, scale_ref, shift_ref, o_ref):
    """Fallback pass 2: y = x * scale + shift."""
    x = x_ref[...].astype(jnp.float32)
    o_ref[...] = (x * scale_ref[...] + shift_ref[...]).astype(o_ref.dtype)


# ----------------------------- wrapper ---------------------------------------


def adain2d_forward(x, weight, bias, eps=1e-5, *, target_block_bytes=8 << 20,
                    force_spatial_tile=None):
    """x: (N, C, H, W); weight/bias: (C,) or (N*C,). Returns (N, C, H, W)."""
    N, C, H, W = x.shape
    NC, HW = N * C, H * W
    itemsize = jnp.dtype(x.dtype).itemsize

    # (N*C, H*W) view: spatial on the lane axis, one row per (n, c) slice.
    # No pad/slice passes: blocks use the full H*W as their last dim (exempt
    # from the 128 rule) and Pallas masks the ragged last row block.
    x2d = x.reshape(NC, HW)

    # Affine params as two (N*C, 1) f32 arrays; (C,)-shaped module params are
    # repeated across the batch, (N*C,)-shaped style params are used as-is.
    w_flat = jnp.asarray(weight, jnp.float32).reshape(-1)
    b_flat = jnp.asarray(bias, jnp.float32).reshape(-1)
    if w_flat.shape[0] == C and NC != C:
        w_flat = jnp.tile(w_flat, N)
        b_flat = jnp.tile(b_flat, N)
    assert w_flat.shape[0] == NC and b_flat.shape[0] == NC
    w2 = w_flat.reshape(NC, 1)
    b2 = b_flat.reshape(NC, 1)

    eps = float(eps)
    min_fused_footprint = _block_footprint(8, HW * itemsize)
    use_spatial = (force_spatial_tile is not None
                   or min_fused_footprint > _VMEM_BLOCK_BUDGET)

    if not use_spatial:
        # ---- fused single-pass path: whole row (full H*W) per block ----
        rt = _pick_row_tile(NC, HW, itemsize, target_block_bytes)
        grid_rows = _cdiv(NC, rt)
        limit = _vmem_limit(_block_footprint(rt, HW * itemsize))

        out2d = pl.pallas_call(
            functools.partial(_adain_fused_kernel, eps=eps, inv_hw=1.0 / HW),
            out_shape=jax.ShapeDtypeStruct((NC, HW), x.dtype),
            grid_spec=pltpu.PrefetchScalarGridSpec(
                num_scalar_prefetch=0,
                grid=(grid_rows,),
                in_specs=[
                    pl.BlockSpec((rt, HW), lambda i: (i, 0)),
                    pl.BlockSpec((rt, 1), lambda i: (i, 0)),
                    pl.BlockSpec((rt, 1), lambda i: (i, 0)),
                ],
                out_specs=pl.BlockSpec((rt, HW), lambda i: (i, 0)),
            ),
            compiler_params=pltpu.CompilerParams(
                dimension_semantics=("parallel",),
                vmem_limit_bytes=limit,
            ),
        )(x2d, w2, b2)
        return out2d.reshape(N, C, H, W)

    # ---- spatial-tiled fallback (huge H*W): two passes over x ----
    rt, s_tile = _pick_spatial_tiles(NC, HW, itemsize, target_block_bytes,
                                     force_spatial_tile)
    grid_rows = _cdiv(NC, rt)
    grid_cols = _cdiv(HW, s_tile)
    limit = _vmem_limit(_block_footprint(rt, s_tile * itemsize))

    scale2, shift2 = pl.pallas_call(
        functools.partial(_adain_moments_kernel, eps=eps, hw=HW, s_tile=s_tile),
        out_shape=(jax.ShapeDtypeStruct((NC, 1), jnp.float32),
                   jax.ShapeDtypeStruct((NC, 1), jnp.float32)),
        grid_spec=pltpu.PrefetchScalarGridSpec(
            num_scalar_prefetch=0,
            grid=(grid_rows, grid_cols),
            in_specs=[
                pl.BlockSpec((rt, s_tile), lambda i, j: (i, j)),
                pl.BlockSpec((rt, 1), lambda i, j: (i, 0)),
                pl.BlockSpec((rt, 1), lambda i, j: (i, 0)),
            ],
            out_specs=[
                pl.BlockSpec((rt, 1), lambda i, j: (i, 0)),
                pl.BlockSpec((rt, 1), lambda i, j: (i, 0)),
            ],
            scratch_shapes=[pltpu.VMEM((rt, 1), jnp.float32),
                            pltpu.VMEM((rt, 1), jnp.float32)],
        ),
        compiler_params=pltpu.CompilerParams(
            dimension_semantics=("parallel", "arbitrary"),
            vmem_limit_bytes=limit,
        ),
    )(x2d, w2, b2)

    out2d = pl.pallas_call(
        _adain_apply_kernel,
        out_shape=jax.ShapeDtypeStruct((NC, HW), x.dtype),
        grid_spec=pltpu.PrefetchScalarGridSpec(
            num_scalar_prefetch=0,
            grid=(grid_rows, grid_cols),
            in_specs=[
                pl.BlockSpec((rt, s_tile), lambda i, j: (i, j)),
                pl.BlockSpec((rt, 1), lambda i, j: (i, 0)),
                pl.BlockSpec((rt, 1), lambda i, j: (i, 0)),
            ],
            out_specs=pl.BlockSpec((rt, s_tile), lambda i, j: (i, j)),
        ),
        compiler_params=pltpu.CompilerParams(
            dimension_semantics=("parallel", "parallel"),
            vmem_limit_bytes=limit,
        ),
    )(x2d, scale2, shift2)
    return out2d.reshape(N, C, H, W)


def adain2d_reference(x, weight, bias, eps=1e-5):
    """Pure-JAX reference matching the PyTorch forward (training-mode BN over
    each (n, c) slice's spatial dims, i.e. instance norm + affine)."""
    xf = x.astype(jnp.float32)
    mean = jnp.mean(xf, axis=(2, 3), keepdims=True)
    var = jnp.mean(jnp.square(xf - mean), axis=(2, 3), keepdims=True)  # biased
    x_hat = (xf - mean) * jax.lax.rsqrt(var + eps)
    N, C, H, W = x.shape
    w = jnp.asarray(weight, jnp.float32).reshape(-1)
    b = jnp.asarray(bias, jnp.float32).reshape(-1)
    if w.shape[0] == C and N * C != C:
        w = jnp.tile(w, N)
        b = jnp.tile(b, N)
    w = w.reshape(N, C, 1, 1)
    b = b.reshape(N, C, 1, 1)
    return (w * x_hat + b).astype(x.dtype)


if __name__ == "__main__":
    key = jax.random.PRNGKey(0)
    kx, kw, kb, kx2 = jax.random.split(key, 4)

    N, C, H, W = 2, 4, 16, 16
    x = jax.random.normal(kx, (N, C, H, W), dtype=jnp.float32)
    # AdaIN scale/shift (module stores them as (num_features,) parameters; in
    # practice they come from a style network). Perturbed so the affine path
    # is actually exercised.
    weight = 1.0 + 0.1 * jax.random.normal(kw, (C,), dtype=jnp.float32)
    bias = 0.1 * jax.random.normal(kb, (C,), dtype=jnp.float32)

    out = adain2d_forward(x, weight, bias, eps=1e-5)
    out = jax.block_until_ready(out)
    ref = adain2d_reference(x, weight, bias, eps=1e-5)
    assert out.shape == (N, C, H, W)
    assert jnp.allclose(out, ref, atol=1e-4, rtol=1e-4), "fused path mismatch"

    # Also exercise the large-H*W spatial-tiled fallback on a small,
    # non-128-multiple spatial size so the in-kernel tail mask is covered.
    H2, W2 = 15, 20
    x2 = jax.random.normal(kx2, (N, C, H2, W2), dtype=jnp.float32)
    out2 = adain2d_forward(x2, weight, bias, eps=1e-5, force_spatial_tile=128)
    out2 = jax.block_until_ready(out2)
    ref2 = adain2d_reference(x2, weight, bias, eps=1e-5)
    assert jnp.allclose(out2, ref2, atol=1e-4, rtol=1e-4), "fallback path mismatch"

    print("KERNEL_OK")
</pallas_src>

<mosaic_0001>
module attributes {stable_mosaic.version = 11 : i64} {
  func.func @_adain_fused_kernel(%arg0: i32, %arg1: memref<8x256xf32, #tpu.memory_space<vmem>>, %arg2: memref<8x1xf32, #tpu.memory_space<vmem>>, %arg3: memref<8x1xf32, #tpu.memory_space<vmem>>, %arg4: memref<8x256xf32, #tpu.memory_space<vmem>>) attributes {dimension_semantics = [#tpu.dimension_semantics<parallel>], iteration_bounds = array<i64: 1>, scalar_prefetch = 0 : i64, scratch_operands = 0 : i64, tpu.core_type = #tpu.core_type<tc>, window_params = [{transform_indices = @transform_0, window_bounds = array<i64: 8, 256>}, {transform_indices = @transform_1, window_bounds = array<i64: 8, 1>}, {transform_indices = @transform_2, window_bounds = array<i64: 8, 1>}, {transform_indices = @transform_3, window_bounds = array<i64: 8, 256>}]} {
    %c0 = arith.constant 0 : index
    %c0_0 = arith.constant 0 : index
    %0 = vector.load %arg1[%c0, %c0_0] : memref<8x256xf32, #tpu.memory_space<vmem>>, vector<8x256xf32>
    %cst = arith.constant dense<0.000000e+00> : vector<8xf32>
    %1 = vector.multi_reduction <add>, %0, %cst [1] : vector<8x256xf32> to vector<8xf32>
    %2 = vector.shape_cast %1 : vector<8xf32> to vector<8x1xf32>
    %cst_1 = arith.constant 3.906250e-03 : f32
    %3 = vector.broadcast %cst_1 : f32 to vector<8x1xf32>
    %4 = arith.mulf %2, %3 : vector<8x1xf32>
    %5 = vector.broadcast %4 : vector<8x1xf32> to vector<8x256xf32>
    %6 = arith.subf %0, %5 : vector<8x256xf32>
    %7 = arith.mulf %6, %6 : vector<8x256xf32>
    %cst_2 = arith.constant dense<0.000000e+00> : vector<8xf32>
    %8 = vector.multi_reduction <add>, %7, %cst_2 [1] : vector<8x256xf32> to vector<8xf32>
    %9 = vector.shape_cast %8 : vector<8xf32> to vector<8x1xf32>
    %cst_3 = arith.constant 3.906250e-03 : f32
    %10 = vector.broadcast %cst_3 : f32 to vector<8x1xf32>
    %11 = arith.mulf %9, %10 : vector<8x1xf32>
    %cst_4 = arith.constant 9.99999974E-6 : f32
    %12 = vector.broadcast %cst_4 : f32 to vector<8x1xf32>
    %13 = arith.addf %11, %12 : vector<8x1xf32>
    %14 = math.rsqrt %13 : vector<8x1xf32>
    %c0_5 = arith.constant 0 : index
    %c0_6 = arith.constant 0 : index
    %15 = vector.load %arg2[%c0_5, %c0_6] : memref<8x1xf32, #tpu.memory_space<vmem>>, vector<8x1xf32>
    %16 = arith.mulf %14, %15 : vector<8x1xf32>
    %17 = vector.broadcast %16 : vector<8x1xf32> to vector<8x256xf32>
    %18 = arith.mulf %6, %17 : vector<8x256xf32>
    %c0_7 = arith.constant 0 : index
    %c0_8 = arith.constant 0 : index
    %19 = vector.load %arg3[%c0_7, %c0_8] : memref<8x1xf32, #tpu.memory_space<vmem>>, vector<8x1xf32>
    %20 = vector.broadcast %19 : vector<8x1xf32> to vector<8x256xf32>
    %21 = arith.addf %18, %20 : vector<8x256xf32>
    %c0_9 = arith.constant 0 : index
    %c0_10 = arith.constant 0 : index
    %22 = vector.load %arg4[%c0_9, %c0_10] : memref<8x256xf32, #tpu.memory_space<vmem>>, vector<8x256xf32>
    tpu.vector_store %arg4[%c0_9, %c0_10], %21 {strides = array<i32>} : memref<8x256xf32, #tpu.memory_space<vmem>>, vector<8x256xf32>,
    return
  }
  func.func @transform_0(%arg0: i32) -> (i32, i32) {
    %c0_i32 = arith.constant 0 : i32
    %c0_i32_0 = arith.constant 0 : i32
    return %arg0, %c0_i32 : i32, i32
  }
  func.func @transform_1(%arg0: i32) -> (i32, i32) {
    %c0_i32 = arith.constant 0 : i32
    %c0_i32_0 = arith.constant 0 : i32
    return %arg0, %c0_i32 : i32, i32
  }
  func.func @transform_2(%arg0: i32) -> (i32, i32) {
    %c0_i32 = arith.constant 0 : i32
    %c0_i32_0 = arith.constant 0 : i32
    return %arg0, %c0_i32 : i32, i32
  }
  func.func @transform_3(%arg0: i32) -> (i32, i32) {
    %c0_i32 = arith.constant 0 : i32
    %c0_i32_0 = arith.constant 0 : i32
    return %arg0, %c0_i32 : i32, i32
  }
}

</mosaic_0001>

<bundles_post_ra>
// kernel: tpu_custom_call.1
= control target key start
LH: loop header
LB: loop body
LE: loop exit
PB: predicated region body
PF: predicated region fallthrough
CT: control target
= control target key end

     0   :  { %s129_s0 = inlined_call_operand.vmem [shape: f32[8,256], index: 0, kind: input, shape index: {}]   ;;  %s130_s1 = inlined_call_operand.vmem [shape: f32[8,1], index: 1, kind: input, shape index: {}]   ;;  %s131_s2 = inlined_call_operand.vmem [shape: f32[8,1], index: 2, kind: input, shape index: {}]   ;;  %s132_s3 = inlined_call_operand.hbm [shape: f32[8,256], index: 3, kind: output, shape index: {}]  }
   0x1   :  { %v15_v0 = vld [vmem:[%s129_s0] sm:$0xff]  ;;  %v16_v1 = vld [vmem:[%s129_s0 + $0x8] sm:$0xff] }
   0x2   :  { %8 = vsyncpa [#allocation3], 0  ;;  %v17_v2 = vadd.f32 %v16_v1, %v15_v0  ;;  %v92_v10 = vmov 0   ;;  %v31_v14 = vld [vmem:[%s130_s1] sm:$0xff]  ;;  %s93_s19 = smov [#allocation2]  }
   0x3   :  { %66 = vset.pattern.permute.xlu1 %v92_v10  ;;  %67 = vset.pattern.permute.xlu0 %v92_v10  ;;  %v40_v17 = vld [vmem:[%s131_s2] sm:$0xff]  ;;  %s56_s20 = sshll.u32 %s93_s19, 4  ;;  %s57_s20 = int_to_ptr.vmem [resolvable:$true] %s56_s20 }
   0x4   :  { %18 = vadd.xlane.f32.xlu0 %v17_v2  ;;  %s70_s1 = scalar_lea.vmem %s57_s20, 256  ;;  %p75_p1 = scmp.lt.s32.totalorder %s57_s20, %s57_s20 }
   0x5   :  { %p71_p0 = scmp.ne.s32.totalorder %s57_s20, %s70_s1  ;;  %p76_p2 = scmp.lt.s32.totalorder %s70_s1, %s70_s1 }
   0x7   :  { %p77_p3 = por %p76_p2, %p75_p1 }
   0x9   :  { %p78_p4 = pnand %p77_p3, %p71_p0 }
  0x8d   :  { %v19_v3 = vpop.xlane.xlu0 %18 }
  0x8e   :  { %v20_v4 = vmul.f32 0.00390625, %v19_v3 }
  0x90   :  { %v21_v5 = vsub.f32 %v15_v0, %v20_v4  ;;  %v22_v6 = vsub.f32 %v16_v1, %v20_v4 }
  0x92   :  { %v23_v7 = vmul.f32 %v21_v5, %v21_v5  ;;  %v24_v8 = vmul.f32 %v22_v6, %v22_v6 }
  0x94   :  { %v25_v9 = vadd.f32 %v24_v8, %v23_v7 }
  0x96   :  { %26 = vadd.xlane.f32.xlu0 %v25_v9 }
 0x11f   :  { %v27_v11 = vpop.xlane.xlu0 %26 }
 0x120   :  { %v28_v12 = vmul.f32 0.00390625, %v27_v11 }
 0x122   :  { %v29_v13 = vadd.f32 1e-05, %v28_v12 }
 0x124   :  { %68 = vrsqrt.f32 %v29_v13 }
 0x131   :  { %v69_v15 = vpop.eup %68 }
 0x132   :  { %v32_v16 = vmul.f32 %v69_v15, %v31_v14 }
 0x134   :  { %35 = vperm.xlu1 %66, %v32_v16  }
 0x138   :  { %43 = vperm.xlu1 %66, %v40_v17  }
 0x1af   :  { %v36_v18 = vpop.permute.xlu1 %35 }
 0x1b0   :  { %v38_v19 = vmul.f32 %v36_v18, %v21_v5  ;;  %v39_v20 = vmul.f32 %v36_v18, %v22_v6 }
 0x1b3   :  { %v44_v21 = vpop.permute.xlu1 %43 }
 0x1b4   :  { %v46_v22 = vadd.f32 %v44_v21, %v38_v19  ;;  %v47_v23 = vadd.f32 %v44_v21, %v39_v20 }
 0x1b6   :  { %48 = vst [vmem:[#allocation2] sm:$0xff] %v46_v22  ;;  %49 = vst [vmem:[#allocation2 + $0x8] sm:$0xff] %v47_v23 }
 0x1b7   :  { %81 = shalt.err (!%p78_p4)
}
 0x1b8   :  { %59 = dma.vmem_to_hbm [thread:$0]  %s57_s20, 256, %s132_s3, [#allocation3]  }
 0x1b9   :  { %90 = dma.done.wait [#allocation3], 256  }
 0x1ba   :  { %91 = vsyncadd [#allocation3], 4294967040 }
 0x1bb   :  { %63 = vsyncpa [#allocation3], 1 }

</bundles_post_ra>
